<compile_context>
chip_gen: v5e
topology: v5e:2x2
jax: 0.10.0
libtpu: 0.0.40
codegen_flags: <defaults>
</compile_context>

<pallas_src>
import math
from functools import partial

import jax
import jax.numpy as jnp
from jax import lax
from jax.experimental import pallas as pl
from jax.experimental.pallas import tpu as pltpu


def _mhsa_kernel(B, L, num_heads, d_head, eps,
                 x_ref, wb_ref, ln_ref, o_ref):
    """x_ref: (B*L, Dm); wb_ref: (Dm+1, 4*Dm); ln_ref: (2, Dm); o_ref: (B*L, Dm)."""
    H = num_heads
    Dm = H * d_head

    x = x_ref[...].astype(jnp.float32)                       # (B*L, Dm)

    # --- LayerNorm (biased variance, eps = 1e-5, matches nn.LayerNorm) ---
    mean = jnp.mean(x, axis=-1, keepdims=True)
    var = jnp.mean((x - mean) ** 2, axis=-1, keepdims=True)
    xn = (x - mean) * lax.rsqrt(var + eps)
    xn = xn * ln_ref[0:1, :] + ln_ref[1:2, :]

    # --- fused Q/K/V (+unused O) projection against packed, pre-transposed W ---
    w = wb_ref[0:Dm, :]                                      # (Dm, 4*Dm)
    b = wb_ref[Dm:Dm + 1, :]                                  # (1, 4*Dm)
    # One lane-dense MXU pass; columns [3*Dm, 4*Dm) (xn @ Wo^T) are unused here.
    proj = jnp.dot(xn, w, preferred_element_type=jnp.float32) + b   # (B*L, 4*Dm)

    # --- gather per-(head, batch) slabs: (H*B, L, d_head), n = h*B + b ---
    def gather_heads(base):
        parts = []
        for h in range(H):
            blk = proj[:, base + h * d_head: base + (h + 1) * d_head]  # (B*L, dh)
            parts.append(blk.reshape(B, L, d_head))
        return jnp.concatenate(parts, axis=0)                # (H*B, L, dh)

    qh = gather_heads(0)
    kh = gather_heads(Dm)
    vh = gather_heads(2 * Dm)

    # --- batched causal attention (ProbSparse degenerates to this) ---
    scale = 1.0 / math.sqrt(d_head)
    s = jnp.einsum('nld,nmd->nlm', qh, kh,
                   preferred_element_type=jnp.float32) * scale        # (H*B, L, L)
    row = lax.broadcasted_iota(jnp.int32, (L, L), 0)
    col = lax.broadcasted_iota(jnp.int32, (L, L), 1)
    causal = (col > row)[None, :, :]                          # triu(1) mask
    s = jnp.where(causal, -jnp.inf, s)

    s_max = jnp.max(s, axis=-1, keepdims=True)
    p = jnp.exp(s - s_max)
    denom = jnp.sum(p, axis=-1, keepdims=True)                # >= exp(0) > 0
    p = p * pl.reciprocal(denom, approx=True)                 # EUP slot

    ctx = jnp.einsum('nlm,nmd->nld', p, vh,
                     preferred_element_type=jnp.float32)      # (H*B, L, dh)

    # --- scatter heads back to feature-contiguous layout: (B*L, Dm) ---
    ctx_heads = []
    for h in range(H):
        slab = ctx[h * B:(h + 1) * B]                         # (B, L, dh)
        ctx_heads.append(slab.reshape(B * L, d_head))
    ctx2d = jnp.concatenate(ctx_heads, axis=-1)               # (B*L, Dm)

    # --- output projection; dropout is eval-mode identity ---
    out = jnp.dot(ctx2d, w[:, 3 * Dm:],
                  preferred_element_type=jnp.float32) + b[:, 3 * Dm:]
    o_ref[...] = out.astype(o_ref.dtype)


def multi_headed_self_attention(x, params, num_heads):
    B, L, Dm = x.shape
    assert Dm % num_heads == 0
    d_head = Dm // num_heads

    # Host-side packing (free layout plumbing): pre-transposed weights + biases
    # in one buffer, LayerNorm affine params in another, x flattened to 2-D.
    w_pack = jnp.concatenate([params["wq"].T, params["wk"].T,
                              params["wv"].T, params["wo"].T], axis=1)   # (Dm, 4*Dm)
    b_pack = jnp.concatenate([params["bq"], params["bk"],
                              params["bv"], params["bo"]])[None, :]      # (1, 4*Dm)
    wb = jnp.concatenate([w_pack, b_pack], axis=0)                       # (Dm+1, 4*Dm)
    ln = jnp.stack([params["ln_w"], params["ln_b"]], axis=0)             # (2, Dm)
    x2d = x.reshape(B * L, Dm)

    kernel = partial(_mhsa_kernel, B, L, num_heads, d_head, 1e-5)

    out2d = pl.pallas_call(
        kernel,
        out_shape=jax.ShapeDtypeStruct((B * L, Dm), x.dtype),
        grid_spec=pltpu.PrefetchScalarGridSpec(
            num_scalar_prefetch=0,
            grid=(1,),                      # whole problem in one step (fits VMEM)
            in_specs=[pl.BlockSpec((B * L, Dm), lambda i: (0, 0)),
                      pl.BlockSpec((Dm + 1, 4 * Dm), lambda i: (0, 0)),
                      pl.BlockSpec((2, Dm), lambda i: (0, 0))],
            out_specs=pl.BlockSpec((B * L, Dm), lambda i: (0, 0))),
        compiler_params=pltpu.CompilerParams(
            dimension_semantics=("arbitrary",)),
    )(x2d, wb, ln)
    # For large B on v7x, split a leading batch grid axis marked "parallel" to
    # use the second TensorCore; unnecessary at these sizes.
    return out2d.reshape(B, L, Dm)


def _reference(x, params, num_heads):
    """Pure-JAX reference of the same forward (for validation)."""
    B, L, Dm = x.shape
    dh = Dm // num_heads
    mean = jnp.mean(x, axis=-1, keepdims=True)
    var = jnp.mean((x - mean) ** 2, axis=-1, keepdims=True)
    xn = (x - mean) / jnp.sqrt(var + 1e-5) * params["ln_w"] + params["ln_b"]
    q = xn @ params["wq"].T + params["bq"]
    k = xn @ params["wk"].T + params["bk"]
    v = xn @ params["wv"].T + params["bv"]
    q = q.reshape(B, L, num_heads, dh).transpose(0, 2, 1, 3)
    k = k.reshape(B, L, num_heads, dh).transpose(0, 2, 1, 3)
    v = v.reshape(B, L, num_heads, dh).transpose(0, 2, 1, 3)
    s = jnp.einsum("bhld,bhmd->bhlm", q, k) / math.sqrt(dh)
    causal = jnp.triu(jnp.ones((L, L), bool), 1)
    s = jnp.where(causal[None, None], -jnp.inf, s)
    p = jax.nn.softmax(s, axis=-1)
    ctx = jnp.einsum("bhlm,bhmd->bhld", p, v)
    ctx = ctx.transpose(0, 2, 1, 3).reshape(B, L, Dm)
    return ctx @ params["wo"].T + params["bo"]


if __name__ == "__main__":
    B, L, d_model, num_heads = 2, 8, 32, 4

    key = jax.random.PRNGKey(0)
    k_x, k_q, k_k, k_v, k_o = jax.random.split(key, 5)

    def xavier(k, shape):
        bound = math.sqrt(6.0 / (shape[0] + shape[1]))
        return jax.random.uniform(k, shape, jnp.float32, -bound, bound)

    params = {
        "ln_w": jnp.ones((d_model,), jnp.float32),
        "ln_b": jnp.zeros((d_model,), jnp.float32),
        "wq": xavier(k_q, (d_model, d_model)), "bq": jnp.zeros((d_model,), jnp.float32),
        "wk": xavier(k_k, (d_model, d_model)), "bk": jnp.zeros((d_model,), jnp.float32),
        "wv": xavier(k_v, (d_model, d_model)), "bv": jnp.zeros((d_model,), jnp.float32),
        "wo": xavier(k_o, (d_model, d_model)), "bo": jnp.zeros((d_model,), jnp.float32),
    }

    x = jax.random.normal(k_x, (B, L, d_model), jnp.float32)

    out = jax.block_until_ready(multi_headed_self_attention(x, params, num_heads))
    ref = _reference(x, params, num_heads)

    assert out.shape == (B, L, d_model)
    # Tolerance covers the EUP approximate-reciprocal in the softmax denominator.
    assert jnp.allclose(out, ref, atol=5e-3, rtol=5e-3), "mismatch vs reference"
    print("KERNEL_OK")
</pallas_src>

<mosaic_0001>
module attributes {stable_mosaic.version = 11 : i64} {
  func.func @_mhsa_kernel(%arg0: i32, %arg1: memref<16x32xf32, #tpu.memory_space<vmem>>, %arg2: memref<33x128xf32, #tpu.memory_space<vmem>>, %arg3: memref<2x32xf32, #tpu.memory_space<vmem>>, %arg4: memref<16x32xf32, #tpu.memory_space<vmem>>) attributes {dimension_semantics = [#tpu.dimension_semantics<arbitrary>], iteration_bounds = array<i64: 1>, scalar_prefetch = 0 : i64, scratch_operands = 0 : i64, tpu.core_type = #tpu.core_type<tc>, window_params = [{pipeline_mode = #tpu.pipeline_mode<synchronous>, transform_indices = @transform_0, window_bounds = array<i64: 16, 32>}, {pipeline_mode = #tpu.pipeline_mode<synchronous>, transform_indices = @transform_1, window_bounds = array<i64: 33, 128>}, {pipeline_mode = #tpu.pipeline_mode<synchronous>, transform_indices = @transform_2, window_bounds = array<i64: 2, 32>}, {pipeline_mode = #tpu.pipeline_mode<synchronous>, transform_indices = @transform_3, window_bounds = array<i64: 16, 32>}]} {
    %c0 = arith.constant 0 : index
    %c0_0 = arith.constant 0 : index
    %0 = vector.load %arg1[%c0, %c0_0] : memref<16x32xf32, #tpu.memory_space<vmem>>, vector<16x32xf32>
    %cst = arith.constant dense<0.000000e+00> : vector<16xf32>
    %1 = vector.multi_reduction <add>, %0, %cst [1] : vector<16x32xf32> to vector<16xf32>
    %2 = vector.shape_cast %1 : vector<16xf32> to vector<16x1xf32>
    %cst_1 = arith.constant 3.200000e+01 : f32
    %3 = vector.broadcast %cst_1 : f32 to vector<16x1xf32>
    %4 = arith.divf %2, %3 : vector<16x1xf32>
    %5 = vector.broadcast %4 : vector<16x1xf32> to vector<16x32xf32>
    %6 = arith.subf %0, %5 : vector<16x32xf32>
    %7 = arith.mulf %6, %6 : vector<16x32xf32>
    %cst_2 = arith.constant dense<0.000000e+00> : vector<16xf32>
    %8 = vector.multi_reduction <add>, %7, %cst_2 [1] : vector<16x32xf32> to vector<16xf32>
    %9 = vector.shape_cast %8 : vector<16xf32> to vector<16x1xf32>
    %cst_3 = arith.constant 3.200000e+01 : f32
    %10 = vector.broadcast %cst_3 : f32 to vector<16x1xf32>
    %11 = arith.divf %9, %10 : vector<16x1xf32>
    %12 = vector.broadcast %4 : vector<16x1xf32> to vector<16x32xf32>
    %13 = arith.subf %0, %12 : vector<16x32xf32>
    %cst_4 = arith.constant 9.99999974E-6 : f32
    %14 = vector.broadcast %cst_4 : f32 to vector<16x1xf32>
    %15 = arith.addf %11, %14 : vector<16x1xf32>
    %16 = math.rsqrt %15 : vector<16x1xf32>
    %17 = vector.broadcast %16 : vector<16x1xf32> to vector<16x32xf32>
    %18 = arith.mulf %13, %17 : vector<16x32xf32>
    %c0_5 = arith.constant 0 : index
    %c0_6 = arith.constant 0 : index
    %19 = vector.load %arg3[%c0_5, %c0_6] : memref<2x32xf32, #tpu.memory_space<vmem>>, vector<1x32xf32>
    %20 = vector.broadcast %19 : vector<1x32xf32> to vector<16x32xf32>
    %21 = arith.mulf %18, %20 : vector<16x32xf32>
    %c1 = arith.constant 1 : index
    %c0_7 = arith.constant 0 : index
    %22 = vector.load %arg3[%c1, %c0_7] : memref<2x32xf32, #tpu.memory_space<vmem>>, vector<1x32xf32>
    %23 = vector.broadcast %22 : vector<1x32xf32> to vector<16x32xf32>
    %24 = arith.addf %21, %23 : vector<16x32xf32>
    %c0_8 = arith.constant 0 : index
    %c0_9 = arith.constant 0 : index
    %25 = vector.load %arg2[%c0_8, %c0_9] : memref<33x128xf32, #tpu.memory_space<vmem>>, vector<32x128xf32>
    %c32 = arith.constant 32 : index
    %c0_10 = arith.constant 0 : index
    %26 = vector.load %arg2[%c32, %c0_10] : memref<33x128xf32, #tpu.memory_space<vmem>>, vector<1x128xf32>
    %cst_11 = arith.constant dense<0.000000e+00> : vector<16x128xf32>
    %27 = tpu.matmul %24, %25, %cst_11 {dimension_numbers = #tpu.dot_dimension_numbers<[1], [0], [0], [1], [0, 0, 1, 1], [], []>} : vector<16x32xf32>, vector<32x128xf32>, vector<16x128xf32> -> vector<16x128xf32>
    %28 = vector.broadcast %26 : vector<1x128xf32> to vector<16x128xf32>
    %29 = arith.addf %27, %28 : vector<16x128xf32>
    %30 = vector.extract_strided_slice %29 {offsets = [0, 0], sizes = [16, 8], strides = [1, 1]} : vector<16x128xf32> to vector<16x8xf32>
    %31 = vector.shape_cast %30 : vector<16x8xf32> to vector<2x8x8xf32>
    %32 = vector.extract_strided_slice %29 {offsets = [0, 8], sizes = [16, 8], strides = [1, 1]} : vector<16x128xf32> to vector<16x8xf32>
    %33 = vector.shape_cast %32 : vector<16x8xf32> to vector<2x8x8xf32>
    %34 = vector.extract_strided_slice %29 {offsets = [0, 16], sizes = [16, 8], strides = [1, 1]} : vector<16x128xf32> to vector<16x8xf32>
    %35 = vector.shape_cast %34 : vector<16x8xf32> to vector<2x8x8xf32>
    %36 = vector.extract_strided_slice %29 {offsets = [0, 24], sizes = [16, 8], strides = [1, 1]} : vector<16x128xf32> to vector<16x8xf32>
    %37 = vector.shape_cast %36 : vector<16x8xf32> to vector<2x8x8xf32>
    %38 = tpu.concatenate %31, %33, %35, %37 in 0 : vector<2x8x8xf32>, vector<2x8x8xf32>, vector<2x8x8xf32>, vector<2x8x8xf32> -> vector<8x8x8xf32>
    %39 = vector.extract_strided_slice %29 {offsets = [0, 32], sizes = [16, 8], strides = [1, 1]} : vector<16x128xf32> to vector<16x8xf32>
    %40 = vector.shape_cast %39 : vector<16x8xf32> to vector<2x8x8xf32>
    %41 = vector.extract_strided_slice %29 {offsets = [0, 40], sizes = [16, 8], strides = [1, 1]} : vector<16x128xf32> to vector<16x8xf32>
    %42 = vector.shape_cast %41 : vector<16x8xf32> to vector<2x8x8xf32>
    %43 = vector.extract_strided_slice %29 {offsets = [0, 48], sizes = [16, 8], strides = [1, 1]} : vector<16x128xf32> to vector<16x8xf32>
    %44 = vector.shape_cast %43 : vector<16x8xf32> to vector<2x8x8xf32>
    %45 = vector.extract_strided_slice %29 {offsets = [0, 56], sizes = [16, 8], strides = [1, 1]} : vector<16x128xf32> to vector<16x8xf32>
    %46 = vector.shape_cast %45 : vector<16x8xf32> to vector<2x8x8xf32>
    %47 = tpu.concatenate %40, %42, %44, %46 in 0 : vector<2x8x8xf32>, vector<2x8x8xf32>, vector<2x8x8xf32>, vector<2x8x8xf32> -> vector<8x8x8xf32>
    %48 = vector.extract_strided_slice %29 {offsets = [0, 64], sizes = [16, 8], strides = [1, 1]} : vector<16x128xf32> to vector<16x8xf32>
    %49 = vector.shape_cast %48 : vector<16x8xf32> to vector<2x8x8xf32>
    %50 = vector.extract_strided_slice %29 {offsets = [0, 72], sizes = [16, 8], strides = [1, 1]} : vector<16x128xf32> to vector<16x8xf32>
    %51 = vector.shape_cast %50 : vector<16x8xf32> to vector<2x8x8xf32>
    %52 = vector.extract_strided_slice %29 {offsets = [0, 80], sizes = [16, 8], strides = [1, 1]} : vector<16x128xf32> to vector<16x8xf32>
    %53 = vector.shape_cast %52 : vector<16x8xf32> to vector<2x8x8xf32>
    %54 = vector.extract_strided_slice %29 {offsets = [0, 88], sizes = [16, 8], strides = [1, 1]} : vector<16x128xf32> to vector<16x8xf32>
    %55 = vector.shape_cast %54 : vector<16x8xf32> to vector<2x8x8xf32>
    %56 = tpu.concatenate %49, %51, %53, %55 in 0 : vector<2x8x8xf32>, vector<2x8x8xf32>, vector<2x8x8xf32>, vector<2x8x8xf32> -> vector<8x8x8xf32>
    "tpu.trace_start"() <{level = 10 : i32, message = "nld,nmd->nlm"}> : () -> ()
    %cst_12 = arith.constant dense<0.000000e+00> : vector<8x8x8xf32>
    %57 = tpu.matmul %38, %47, %cst_12 {dimension_numbers = #tpu.dot_dimension_numbers<[2], [2], [1], [1], [0, 0, 0, 1, 1, 1], [0], [0]>} : vector<8x8x8xf32>, vector<8x8x8xf32>, vector<8x8x8xf32> -> vector<8x8x8xf32>
    "tpu.trace_stop"() : () -> ()
    %cst_13 = arith.constant 0.353553385 : f32
    %58 = vector.broadcast %cst_13 : f32 to vector<8x8x8xf32>
    %59 = arith.mulf %57, %58 : vector<8x8x8xf32>
    %60 = tpu.iota {dimensions = array<i32: 0>} : vector<8x8xi32>
    %61 = tpu.iota {dimensions = array<i32: 1>} : vector<8x8xi32>
    %62 = arith.cmpi sgt, %61, %60 : vector<8x8xi32>
    %63 = vector.shape_cast %62 : vector<8x8xi1> to vector<1x8x8xi1>
    %cst_14 = arith.constant 0xFF800000 : f32
    %64 = vector.shape_cast %63 : vector<1x8x8xi1> to vector<1x8x8xi1>
    %65 = vector.broadcast %64 : vector<1x8x8xi1> to vector<8x8x8xi1>
    %66 = vector.broadcast %cst_14 : f32 to vector<8x8x8xf32>
    %67 = arith.select %65, %66, %59 : vector<8x8x8xi1>, vector<8x8x8xf32>
    %cst_15 = arith.constant dense<0xFF800000> : vector<8x8xf32>
    %68 = vector.multi_reduction <maximumf>, %67, %cst_15 [2] : vector<8x8x8xf32> to vector<8x8xf32>
    %69 = vector.shape_cast %68 : vector<8x8xf32> to vector<8x8x1xf32>
    %70 = vector.broadcast %69 : vector<8x8x1xf32> to vector<8x8x8xf32>
    %71 = arith.subf %67, %70 : vector<8x8x8xf32>
    %72 = math.exp %71 : vector<8x8x8xf32>
    %cst_16 = arith.constant dense<0.000000e+00> : vector<8x8xf32>
    %73 = vector.multi_reduction <add>, %72, %cst_16 [2] : vector<8x8x8xf32> to vector<8x8xf32>
    %74 = vector.shape_cast %73 : vector<8x8xf32> to vector<8x8x1xf32>
    %75 = tpu.reciprocal %74 {approx = true} : vector<8x8x1xf32> -> vector<8x8x1xf32>
    %76 = vector.broadcast %75 : vector<8x8x1xf32> to vector<8x8x8xf32>
    %77 = arith.mulf %72, %76 : vector<8x8x8xf32>
    "tpu.trace_start"() <{level = 10 : i32, message = "nlm,nmd->nld"}> : () -> ()
    %cst_17 = arith.constant dense<0.000000e+00> : vector<8x8x8xf32>
    %78 = tpu.matmul %77, %56, %cst_17 {dimension_numbers = #tpu.dot_dimension_numbers<[2], [1], [1], [2], [0, 0, 0, 1, 1, 2], [0], [0]>} : vector<8x8x8xf32>, vector<8x8x8xf32>, vector<8x8x8xf32> -> vector<8x8x8xf32>
    "tpu.trace_stop"() : () -> ()
    %79 = vector.extract_strided_slice %78 {offsets = [0, 0, 0], sizes = [2, 8, 8], strides = [1, 1, 1]} : vector<8x8x8xf32> to vector<2x8x8xf32>
    %80 = vector.shape_cast %79 : vector<2x8x8xf32> to vector<16x8xf32>
    %81 = vector.extract_strided_slice %78 {offsets = [2, 0, 0], sizes = [2, 8, 8], strides = [1, 1, 1]} : vector<8x8x8xf32> to vector<2x8x8xf32>
    %82 = vector.shape_cast %81 : vector<2x8x8xf32> to vector<16x8xf32>
    %83 = vector.extract_strided_slice %78 {offsets = [4, 0, 0], sizes = [2, 8, 8], strides = [1, 1, 1]} : vector<8x8x8xf32> to vector<2x8x8xf32>
    %84 = vector.shape_cast %83 : vector<2x8x8xf32> to vector<16x8xf32>
    %85 = vector.extract_strided_slice %78 {offsets = [6, 0, 0], sizes = [2, 8, 8], strides = [1, 1, 1]} : vector<8x8x8xf32> to vector<2x8x8xf32>
    %86 = vector.shape_cast %85 : vector<2x8x8xf32> to vector<16x8xf32>
    %87 = tpu.concatenate %80, %82, %84, %86 in 1 : vector<16x8xf32>, vector<16x8xf32>, vector<16x8xf32>, vector<16x8xf32> -> vector<16x32xf32>
    %88 = vector.extract_strided_slice %25 {offsets = [0, 96], sizes = [32, 32], strides = [1, 1]} : vector<32x128xf32> to vector<32x32xf32>
    %cst_18 = arith.constant dense<0.000000e+00> : vector<16x32xf32>
    %89 = tpu.matmul %87, %88, %cst_18 {dimension_numbers = #tpu.dot_dimension_numbers<[1], [0], [0], [1], [0, 0, 1, 1], [], []>} : vector<16x32xf32>, vector<32x32xf32>, vector<16x32xf32> -> vector<16x32xf32>
    %90 = vector.extract_strided_slice %26 {offsets = [0, 96], sizes = [1, 32], strides = [1, 1]} : vector<1x128xf32> to vector<1x32xf32>
    %91 = vector.broadcast %90 : vector<1x32xf32> to vector<16x32xf32>
    %92 = arith.addf %89, %91 : vector<16x32xf32>
    %c0_19 = arith.constant 0 : index
    %c0_20 = arith.constant 0 : index
    %93 = vector.load %arg4[%c0_19, %c0_20] : memref<16x32xf32, #tpu.memory_space<vmem>>, vector<16x32xf32>
    tpu.vector_store %arg4[%c0_19, %c0_20], %92 {strides = array<i32>} : memref<16x32xf32, #tpu.memory_space<vmem>>, vector<16x32xf32>,
    return
  }
  func.func @transform_0(%arg0: i32) -> (i32, i32) {
    %c0_i32 = arith.constant 0 : i32
    %c0_i32_0 = arith.constant 0 : i32
    %c0_i32_1 = arith.constant 0 : i32
    return %c0_i32, %c0_i32_0 : i32, i32
  }
  func.func @transform_1(%arg0: i32) -> (i32, i32) {
    %c0_i32 = arith.constant 0 : i32
    %c0_i32_0 = arith.constant 0 : i32
    %c0_i32_1 = arith.constant 0 : i32
    return %c0_i32, %c0_i32_0 : i32, i32
  }
  func.func @transform_2(%arg0: i32) -> (i32, i32) {
    %c0_i32 = arith.constant 0 : i32
    %c0_i32_0 = arith.constant 0 : i32
    %c0_i32_1 = arith.constant 0 : i32
    return %c0_i32, %c0_i32_0 : i32, i32
  }
  func.func @transform_3(%arg0: i32) -> (i32, i32) {
    %c0_i32 = arith.constant 0 : i32
    %c0_i32_0 = arith.constant 0 : i32
    %c0_i32_1 = arith.constant 0 : i32
    return %c0_i32, %c0_i32_0 : i32, i32
  }
}

</mosaic_0001>

<bundles_post_ra>
// kernel: tpu_custom_call.1
= control target key start
LH: loop header
LB: loop body
LE: loop exit
PB: predicated region body
PF: predicated region fallthrough
CT: control target
= control target key end

     0   :  { %8 = vsyncpa [#allocation3], 0  ;;  %s1240_s0 = inlined_call_operand.hbm [shape: f32[16,32], index: 0, kind: input, shape index: {}]   ;;  %s1241_s1 = inlined_call_operand.hbm [shape: f32[33,128], index: 1, kind: input, shape index: {}]   ;;  %s1242_s2 = inlined_call_operand.hbm [shape: f32[2,32], index: 2, kind: input, shape index: {}]   ;;  %s1243_s3 = inlined_call_operand.hbm [shape: f32[16,32], index: 3, kind: output, shape index: {}]  }
   0x1   :  { %9 = vsyncpa [#allocation6], 0 }
   0x2   :  { %10 = vsyncpa [#allocation4], 0  ;;  %s28_s14 = sshll.u32 %s1241_s1, 4  ;;  %s1013_s15 = smov [#allocation5]   ;;  %s29_s14 = int_to_ptr.hbm [resolvable:$true] %s28_s14 }
   0x3   :  { %s30_s16 = sshll.u32 %s1013_s15, 4  ;;  %s15_s19 = sshll.u32 %s1240_s0, 4  ;;  %s31_s16 = int_to_ptr.vmem [resolvable:$true] %s30_s16  ;;  %s16_s19 = int_to_ptr.hbm [resolvable:$true] %s15_s19 }
   0x4   :  { %s1014_s20 = smov 128   ;;  %s1015_s21 = smov 8  }
   0x5   :  { %36 = dma.hbm_to_vmem [thread:$0]  %s29_s14, 640, %s31_s16, [#allocation6], %s1014_s20, %s1014_s20, %s1015_s21  }
   0x6   :  { %s1016_s22 = smov [#allocation2]   ;;  %s42_s1 = sshll.u32 %s1242_s2, 4  ;;  %s43_s1 = int_to_ptr.hbm [resolvable:$true] %s42_s1 }
   0x7   :  { %s17_s23 = sshll.u32 %s1016_s22, 4  ;;  %s1017_s0 = smov [#allocation7]   ;;  %s18_s23 = int_to_ptr.vmem [resolvable:$true] %s17_s23 }
   0x8   :  { %23 = dma.hbm_to_vmem [thread:$0]  %s16_s19, 256, %s18_s23, [#allocation3], %s1014_s20, %s1014_s20, %s1015_s21  }
   0x9   :  { %s44_s26 = sshll.u32 %s1017_s0, 4  ;;  %s45_s26 = int_to_ptr.vmem [resolvable:$true] %s44_s26 }
   0xa   :  { %47 = dma.hbm_to_vmem [thread:$0]  %s43_s1, 32, %s45_s26, [#allocation6]  }
   0xb   :  { %1007 = dma.done.wait [#allocation3], 256  }
   0xc   :  { %1008 = vsyncadd [#allocation3], 4294967040 }
   0xd   :  { %1009 = dma.done.wait [#allocation6], 672  }
   0xe   :  { %1010 = vsyncadd [#allocation6], 4294966624  ;;  %vm62_vm0 = vcmask 261120   ;;  %v60_v0 = vld [vmem:[#allocation2] sm:$0xff]  ;;  %v61_v2 = vld [vmem:[#allocation2 + $0x8] sm:$0xff]  ;;  %v1018_v4 = vmov 32.0  }
   0xf   :  { %v63_v1 = vsel %vm62_vm0, %v60_v0, 0.0  ;;  %v66_v3 = vsel %vm62_vm0, %v61_v2, 0.0  ;;  %873 = vrcp.f32 %v1018_v4  ;;  %v1067_v21 = vld [vmem:[#allocation5 + $0x18] sm:$0xff]  ;;  %v1070_v22 = vld [vmem:[#allocation5 + $0x10] sm:$0xff]  ;;  %v1073_v23 = vld [vmem:[#allocation5 + $0x8] sm:$0xff]  ;;  %s1019_s2 = smov 112  }
  0x10   :  { %64 = vadd.xlane.f32.xlu0 %v63_v1  ;;  %146 = vmatpush.msra.mxu0 %v1067_v21  ;;  %v1076_v24 = vld [vmem:[#allocation5] sm:$0xff]  ;;  %v860_v25 = vpack.i.bf16 %v1070_v22, %v1067_v21  ;;  %v870_v41 = vld [vmem:[#allocation7] ss:$0 sm:$0xff]  ;;  %v871_v45 = vld [vmem:[#allocation7 + $0x1] ss:$0 sm:$0xff]  ;;  %s1020_s27 = smov 120  }
  0x11   :  { %v865_v26 = vpack.i.bf16 %v1076_v24, %v1073_v23  ;;  %v1085_v55 = vld [vmem:[#allocation5 + $0x20] ss:$0 sm:$0xff]  ;;  %s1021_s28 = smov 104   ;;  %s1022_s29 = smov 96   ;;  %vm173_vm8 = vcmask 64512   ;;  %vm725_vm10 = vcmask 130048  }
  0x12   :  { %147 = vmatpush.msra.mxu0 %v1070_v22  ;;  %s1023_s30 = smov 64   ;;  %s1024_s4 = smov 32   ;;  %vm728_vm11 = vcmask 195584  }
  0x13   :  { %s1025_s5 = smov 24   ;;  %s1026_s6 = smov 16  }
  0x14   :  { %148 = vmatpush.msra.mxu0 %v1073_v23  ;;  %s1027_s7 = smov [#allocation8]   ;;  %s788_s11 = sshll.u32 %s1243_s3, 4  ;;  %s789_s11 = int_to_ptr.hbm [resolvable:$true] %s788_s11 }
  0x15   :  { %v874_v5 = vpop.eup %873  ;;  %s786_s8 = sshll.u32 %s1027_s7, 4  ;;  %s787_s8 = int_to_ptr.vmem [resolvable:$true] %s786_s8 }
  0x16   :  { %v70_v6 = vmul.f32 32.0, %v874_v5  ;;  %vm74_vm1 = vweird.f32 %v874_v5  ;;  %149 = vmatpush.msra.mxu0 %v1076_v24 }
  0x18   :  { %67 = vadd.xlane.f32.xlu0 %v66_v3  ;;  %v71_v7 = vsub.f32 1.0, %v70_v6 }
  0x1a   :  { %v72_v8 = vmul.f32 %v874_v5, %v71_v7 }
  0x1c   :  { %v73_v9 = vadd.f32 %v874_v5, %v72_v8 }
  0x1e   :  { %v75_v10 = vsel %vm74_vm1, %v874_v5, %v73_v9 }
  0x83   :  { %v65_v11 = vpop.xlane.xlu0 %64 }
  0x84   :  { %v76_v12 = vmul.f32 %v75_v10, %v65_v11 }
  0x86   :  { %v78_v13 = vsub.f32 %v60_v0, %v76_v12 }
  0x88   :  { %v80_v14 = vmul.f32 %v78_v13, %v78_v13 }
  0x8a   :  { %v82_v15 = vsel %vm62_vm0, %v80_v14, 0.0 }
  0x8b   :  { %83 = vadd.xlane.f32.xlu1 %v82_v15  ;;  %v68_v16 = vpop.xlane.xlu0 %67 }
  0x8c   :  { %v77_v17 = vmul.f32 %v75_v10, %v68_v16 }
  0x8e   :  { %v79_v18 = vsub.f32 %v61_v2, %v77_v17 }
  0x90   :  { %v81_v19 = vmul.f32 %v79_v18, %v79_v18 }
  0x92   :  { %v85_v20 = vsel %vm62_vm0, %v81_v19, 0.0 }
  0x93   :  { %86 = vadd.xlane.f32.xlu1 %v85_v20 }
  0xfe   :  { %v84_v27 = vpop.xlane.xlu1 %83 }
  0xff   :  { %v88_v28 = vmul.f32 %v84_v27, %v75_v10 }
 0x101   :  { %v90_v29 = vadd.f32 1e-05, %v88_v28 }
 0x103   :  { %875 = vrsqrt.f32 %v90_v29  ;;  %vm98_vm3 = vweird.f32 %v90_v29 }
 0x106   :  { %v87_v30 = vpop.xlane.xlu1 %86 }
 0x107   :  { %v89_v31 = vmul.f32 %v87_v30, %v75_v10  ;;  %v388_v10 = vlaneseq }
 0x109   :  { %v876_v32 = vpop.eup %875  ;;  %v91_v33 = vadd.f32 1e-05, %v89_v31  ;;  %v389_v11 = vshrl.u32 %v388_v10, 7  ;;  %v391_v12 = vand.u32 127, %v388_v10 }
 0x10a   :  { %v93_v34 = vmul.f32 %v876_v32, %v90_v29  ;;  %vm99_vm2 = vweird.f32 %v876_v32 }
 0x10b   :  { %877 = vrsqrt.f32 %v91_v33  ;;  %vm100_vm4 = vmor %vm98_vm3, %vm99_vm2  ;;  %vm108_vm6 = vweird.f32 %v91_v33  ;;  %vm1143_vm9 = vcmp.gt.s32.totalorder %v391_v12, %v389_v11 }
 0x10c   :  { %v94_v35 = vmul.f32 %v876_v32, %v93_v34 }
 0x10e   :  { %v95_v36 = vmul.f32 0.5, %v94_v35 }
 0x110   :  { %v96_v37 = vsub.f32 1.5, %v95_v36 }
 0x111   :  { %v878_v38 = vpop.eup %877 }
 0x112   :  { %v97_v39 = vmul.f32 %v876_v32, %v96_v37  ;;  %v103_v40 = vmul.f32 %v878_v38, %v91_v33  ;;  %vm109_vm5 = vweird.f32 %v878_v38 }
 0x113   :  { %vm110_vm7 = vmor %vm108_vm6, %vm109_vm5 }
 0x114   :  { %v101_v42 = vsel %vm100_vm4, %v876_v32, %v97_v39  ;;  %v104_v43 = vmul.f32 %v878_v38, %v103_v40 }
 0x115   :  { %v112_v44 = vmul.f32 %v101_v42, %v78_v13 }
 0x116   :  { %v105_v46 = vmul.f32 0.5, %v104_v43 }
 0x117   :  { %v116_v47 = vmul.f32 %v870_v41, %v112_v44 }
 0x118   :  { %v106_v48 = vsub.f32 1.5, %v105_v46 }
 0x119   :  { %v120_v49 = vadd.f32 %v871_v45, %v116_v47 }
 0x11a   :  { %v107_v50 = vmul.f32 %v878_v38, %v106_v48 }
 0x11b   :  { %802 = vmatmul.msk.f32.vlgmr.msra.gmra.mxu0 %vm62_vm0, %v120_v49 }
 0x11c   :  { %v111_v51 = vsel %vm110_vm7, %v878_v38, %v107_v50 }
 0x11d   :  { %v113_v52 = vmul.f32 %v111_v51, %v79_v18 }
 0x11f   :  { %v117_v53 = vmul.f32 %v870_v41, %v113_v52 }
 0x121   :  { %v121_v54 = vadd.f32 %v871_v45, %v117_v53 }
 0x123   :  { %803 = vmatmul.msk.f32.gmra.mxu0 %vm62_vm0, %v121_v54 }
 0x198   :  { %v151_v56 = vpop.f32.mrf.mxu0 }
 0x199   :  { %v1088_v57 = vadd.f32 %v1085_v55, %v151_v56 }
 0x19b   :  { %163 = vrot.lane.b32.xlu2 %v1088_v57, %s1019_s2 }
 0x1a0   :  { %v154_v58 = vpop.f32.mrf.mxu0 }
 0x1a1   :  { %v1092_v59 = vadd.f32 %v1085_v55, %v154_v58 }
 0x1a3   :  { %159 = vrot.lane.b32.xlu2 %v1088_v57, %s1020_s27  ;;  %169 = vrot.lane.b32.xlu1 %v1092_v59, %s1021_s28 }
 0x1a4   :  { %161 = vrot.lane.b32.xlu0 %v1092_v59, %s1020_s27 }
 0x1ab   :  { %167 = vrot.lane.b32.xlu2 %v1088_v57, %s1021_s28 }
 0x1ac   :  { %171 = vrot.lane.b32.xlu0 %v1088_v57, %s1022_s29 }
 0x1b3   :  { %165 = vrot.lane.b32.xlu2 %v1092_v59, %s1019_s2 }
 0x1bb   :  { %198 = vrot.lane.b32.xlu2 %v1092_v59, %s1022_s29 }
 0x1f5   :  { %v1101_v60 = vpop.permute.xlu2 %163 }
 0x1f6   :  { %276 = vrot.lane.b32.xlu2 %v1101_v60, %s1022_s29 }
 0x1fd   :  { %v1104_v61 = vpop.permute.xlu2 %159 }
 0x1fe   :  { %224 = vrot.lane.b32.xlu1 %v1104_v61, %s1022_s29 }
 0x205   :  { %v1107_v62 = vpop.permute.xlu2 %167 }
 0x206   :  { %328 = vrot.lane.b32.xlu1 %v1107_v62, %s1022_s29 }
 0x20d   :  { %v1110_v63 = vpop.permute.xlu2 %165 }
 0x215   :  { %v199_v0 = vpop.permute.xlu2 %198  ;;  %v1112_v1 = vpop.permute.xlu1 %169 }
 0x216   :  { %v1114_v2 = vpop.permute.xlu0 %161  ;;  %806 = vmatpush.xpose.msk.msra.mxu2 %vm173_vm8, %v199_v0  ;;  %354 = vrot.lane.b32.xlu2 %v1112_v1, %s1022_s29 }
 0x217   :  { %250 = vrot.lane.b32.xlu0 %v1114_v2, %s1022_s29 }
 0x219   :  { %807 = vmatmul.msk.f32.vlgmr.msra.gmra.mxu2 %vm173_vm8, %v1092_v59 }
 0x21e   :  { %v172_v3 = vpop.permute.xlu0 %171 }
 0x21f   :  { %302 = vrot.lane.b32.xlu0 %v1110_v63, %s1022_s29  ;;  %804 = vmatpush.xpose.msk.msra.mxu1 %vm173_vm8, %v172_v3 }
 0x222   :  { %805 = vmatmul.msk.f32.vlgmr.msra.gmra.mxu1 %vm173_vm8, %v1088_v57 }
 0x250   :  { %v277_v4 = vpop.permute.xlu2 %276 }
 0x251   :  { %812 = vmatpush.xpose.msk.msrb.mxu2 %vm173_vm8, %v277_v4 }
 0x254   :  { %813 = vmatmul.msk.f32.vlgmr.msrb.gmra.mxu2 %vm173_vm8, %v1101_v60 }
 0x270   :  { %v355_v5 = vpop.permute.xlu2 %354  ;;  %v225_v6 = vpop.permute.xlu1 %224 }
 0x271   :  { %808 = vmatpush.xpose.msk.msrb.mxu0 %vm173_vm8, %v225_v6  ;;  %818 = vmatpush.xpose.msk.msra.mxu2 %vm173_vm8, %v355_v5 }
 0x274   :  { %809 = vmatmul.msk.f32.vlgmr.msrb.gmra.mxu0 %vm173_vm8, %v1104_v61  ;;  %819 = vmatmul.msk.f32.vlgmr.msra.gmra.mxu2 %vm173_vm8, %v1112_v1 }
 0x278   :  { %v329_v8 = vpop.permute.xlu1 %328 }
 0x289   :  { %v251_v7 = vpop.permute.xlu0 %250 }
 0x28a   :  { %810 = vmatpush.xpose.msk.msrb.mxu1 %vm173_vm8, %v251_v7  ;;  %v845_v7 = vpack.i.bf16 %v1104_v61, %v1088_v57 }
 0x28d   :  { %811 = vmatmul.msk.f32.vlgmr.msrb.gmra.mxu1 %vm173_vm8, %v1114_v2 }
 0x28e   :  { %816 = vmatpush.xpose.msk.msra.mxu1 %vm173_vm8, %v329_v8 }
 0x291   :  { %v303_v9 = vpop.permute.xlu0 %302 }
 0x292   :  { %814 = vmatpush.xpose.msk.msra.mxu3 %vm173_vm8, %v303_v9 }
 0x295   :  { %815 = vmatmul.msk.f32.vlgmr.msra.gmra.mxu3 %vm173_vm8, %v1110_v63  ;;  %817 = vmatmul.msk.f32.vlgmr.msra.gmra.mxu1 %vm173_vm8, %v1107_v62 }
 0x29c   :  { %v221_v13 = vpop.f32.mrf.mxu2 }
 0x29d   :  { %v381_v15 = vmul.f32 0.35355338, %v221_v13 }
 0x29f   :  { %v195_v16 = vpop.f32.mrf.mxu1  ;;  %v396_v17 = vsel %vm1143_vm9, -inf, %v381_v15 }
 0x2a0   :  { %v380_v18 = vmul.f32 0.35355338, %v195_v16  ;;  %v406_v19 = vsel %vm173_vm8, %v396_v17, -inf }
 0x2a1   :  { %407 = vmax.xlane.f32.xlu1 %v406_v19 }
 0x2a2   :  { %v395_v20 = vsel %vm1143_vm9, -inf, %v380_v18 }
 0x2a3   :  { %v403_v27 = vsel %vm173_vm8, %v395_v20, -inf }
 0x2a4   :  { %404 = vmax.xlane.f32.xlu2 %v403_v27  ;;  %v855_v27 = vpack.i.bf16 %v1107_v62, %v1092_v59 }
 0x2d7   :  { %v299_v28 = vpop.f32.mrf.mxu2 }
 0x2d8   :  { %v384_v29 = vmul.f32 0.35355338, %v299_v28 }
 0x2da   :  { %v399_v30 = vsel %vm1143_vm9, -inf, %v384_v29 }
 0x2db   :  { %v415_v31 = vsel %vm173_vm8, %v399_v30, -inf }
 0x2dc   :  { %416 = vmax.xlane.f32.xlu0 %v415_v31 }
 0x2f1   :  { %v247_v32 = vpop.f32.mrf.mxu0 }
 0x2f2   :  { %v382_v33 = vmul.f32 0.35355338, %v247_v32 }
 0x2f4   :  { %v397_v34 = vsel %vm1143_vm9, -inf, %v382_v33 }
 0x2f5   :  { %v409_v35 = vsel %vm173_vm8, %v397_v34, -inf }
 0x2f6   :  { %410 = vmax.xlane.f32.xlu1 %v409_v35 }
 0x2f7   :  { %v377_v38 = vpop.f32.mrf.mxu2 }
 0x2f8   :  { %v387_v41 = vmul.f32 0.35355338, %v377_v38 }
 0x2fa   :  { %v402_v42 = vsel %vm1143_vm9, -inf, %v387_v41 }
 0x2fb   :  { %v424_v45 = vsel %vm173_vm8, %v402_v42, -inf }
 0x30a   :  { %v273_v36 = vpop.f32.mrf.mxu1 }
 0x30b   :  { %v383_v37 = vmul.f32 0.35355338, %v273_v36 }
 0x30d   :  { %v398_v39 = vsel %vm1143_vm9, -inf, %v383_v37 }
 0x30e   :  { %v412_v40 = vsel %vm173_vm8, %v398_v39, -inf }
 0x30f   :  { %413 = vmax.xlane.f32.xlu2 %v412_v40 }
 0x312   :  { %v351_v56 = vpop.f32.mrf.mxu1 }
 0x313   :  { %v386_v3 = vmul.f32 0.35355338, %v351_v56 }
 0x314   :  { %v408_v43 = vpop.xlane.xlu1 %407 }
 0x315   :  { %v428_v44 = vsub.f32 %v396_v17, %v408_v43  ;;  %v401_v5 = vsel %vm1143_vm9, -inf, %v386_v3 }
 0x316   :  { %v421_v6 = vsel %vm173_vm8, %v401_v5, -inf }
 0x317   :  { %v437_v46 = vmul.f32 1.442695, %v428_v44  ;;  %v405_v47 = vpop.xlane.xlu2 %404  ;;  %425 = vmax.xlane.f32.xlu2 %v424_v45 }
 0x318   :  { %v427_v48 = vsub.f32 %v395_v20, %v405_v47  ;;  %v325_v49 = vpop.f32.mrf.mxu3 }
 0x319   :  { %v385_v50 = vmul.f32 0.35355338, %v325_v49  ;;  %879 = vpow2.f32 %v437_v46  ;;  %v850_v46 = vpack.i.bf16 %v1114_v2, %v1101_v60 }
 0x31a   :  { %v435_v51 = vmul.f32 1.442695, %v427_v48 }
 0x31b   :  { %v400_v52 = vsel %vm1143_vm9, -inf, %v385_v50 }
 0x31c   :  { %881 = vpow2.f32 %v435_v51  ;;  %v418_v53 = vsel %vm173_vm8, %v400_v52, -inf }
 0x31d   :  { %419 = vmax.xlane.f32.xlu1 %v418_v53 }
 0x31f   :  { %v1168_v54 = vpop.eup %879 }
 0x320   :  { %v454_v4 = vsel %vm173_vm8, %v1168_v54, 0.0 }
 0x322   :  { %v882_v58 = vpop.eup %881 }
 0x323   :  { %v451_v0 = vsel %vm173_vm8, %v882_v58, 0.0 }
 0x324   :  { %452 = vadd.xlane.f32.xlu0 %v451_v0 }
 0x325   :  { %455 = vadd.xlane.f32.xlu1 %v454_v4 }
 0x32c   :  { %422 = vmax.xlane.f32.xlu0 %v421_v6 }
 0x32f   :  { %846 = vrot.lane.b32.xlu2 %v845_v7, %s1023_s30 }
 0x34f   :  { %v417_v8 = vpop.xlane.xlu0 %416 }
 0x350   :  { %v431_v9 = vsub.f32 %v399_v30, %v417_v8 }
 0x352   :  { %v443_v10 = vmul.f32 1.442695, %v431_v9 }
 0x354   :  { %883 = vpow2.f32 %v443_v10 }
 0x35a   :  { %v1179_v11 = vpop.eup %883 }
 0x35b   :  { %v463_v12 = vsel %vm173_vm8, %v1179_v11, 0.0 }
 0x35c   :  { %464 = vadd.xlane.f32.xlu1 %v463_v12 }
 0x369   :  { %v411_v13 = vpop.xlane.xlu1 %410 }
 0x36a   :  { %v429_v14 = vsub.f32 %v397_v34, %v411_v13 }
 0x36c   :  { %v439_v15 = vmul.f32 1.442695, %v429_v14 }
 0x36e   :  { %885 = vpow2.f32 %v439_v15 }
 0x374   :  { %v886_v16 = vpop.eup %885 }
 0x375   :  { %v457_v57 = vsel %vm173_vm8, %v886_v16, 0.0 }
 0x376   :  { %458 = vadd.xlane.f32.xlu2 %v457_v57 }
 0x382   :  { %v414_v61 = vpop.xlane.xlu2 %413 }
 0x383   :  { %v430_v17 = vsub.f32 %v398_v39, %v414_v61 }
 0x385   :  { %v441_v18 = vmul.f32 1.442695, %v430_v17 }
 0x387   :  { %887 = vpow2.f32 %v441_v18 }
 0x38a   :  { %v426_v19 = vpop.xlane.xlu2 %425 }
 0x38b   :  { %v434_v20 = vsub.f32 %v402_v42, %v426_v19 }
 0x38d   :  { %v1186_v28 = vpop.eup %887  ;;  %v449_v29 = vmul.f32 1.442695, %v434_v20 }
 0x38e   :  { %856 = vrot.lane.b32.xlu2 %v855_v27, %s1023_s30  ;;  %v460_v30 = vsel %vm173_vm8, %v1186_v28, 0.0 }
 0x38f   :  { %889 = vpow2.f32 %v449_v29  ;;  %461 = vadd.xlane.f32.xlu0 %v460_v30 }
 0x390   :  { %v420_v31 = vpop.xlane.xlu1 %419 }
 0x391   :  { %v432_v32 = vsub.f32 %v400_v52, %v420_v31 }
 0x392   :  { %v847_v33 = vpop.permute.xlu2 %846 }
 0x393   :  { %v445_v34 = vmul.f32 1.442695, %v432_v32  ;;  %v849_v35 = vunpack.i.h.bf16 %v847_v33  ;;  %v848_v36 = vunpack.i.l.bf16 %v847_v33 }
 0x395   :  { %v1191_v37 = vpop.eup %889  ;;  %891 = vpow2.f32 %v445_v34  ;;  %512 = vmatpush.msrb.mxu3 %v848_v36  ;;  %564 = vmatpush.msrb.mxu1 %v849_v35 }
 0x396   :  { %621 = vrot.lane.b32.xlu2 %v1110_v63, %s1023_s30  ;;  %v472_v59 = vsel %vm173_vm8, %v1191_v37, 0.0 }
 0x397   :  { %473 = vadd.xlane.f32.xlu1 %v472_v59  ;;  %v453_v62 = vpop.xlane.xlu0 %452 }
 0x398   :  { %893 = vrcp.f32 %v453_v62  ;;  %v456_v47 = vpop.xlane.xlu1 %455 }
 0x39b   :  { %v892_v38 = vpop.eup %891 }
 0x39c   :  { %v466_v40 = vsel %vm173_vm8, %v892_v38, 0.0 }
 0x39e   :  { %v894_v39 = vpop.eup %893 }
 0x39f   :  { %467 = vadd.xlane.f32.xlu1 %v466_v40  ;;  %v423_v41 = vpop.xlane.xlu0 %422  ;;  %v483_v42 = vmul.f32 %v894_v39, %v882_v58 }
 0x3a0   :  { %v433_v43 = vsub.f32 %v401_v5, %v423_v41 }
 0x3a1   :  { %820 = vmatmul.msk.f32.vlgmr.msrb.gmra.mxu3 %vm173_vm8, %v483_v42 }
 0x3a2   :  { %v447_v44 = vmul.f32 1.442695, %v433_v43 }
 0x3a4   :  { %895 = vpow2.f32 %v447_v44 }
 0x3a5   :  { %897 = vrcp.f32 %v456_v47 }
 0x3aa   :  { %v896_v45 = vpop.eup %895 }
 0x3ab   :  { %v469_v63 = vsel %vm173_vm8, %v896_v45, 0.0  ;;  %v898_v49 = vpop.eup %897 }
 0x3ac   :  { %470 = vadd.xlane.f32.xlu0 %v469_v63  ;;  %v484_v58 = vmul.f32 %v898_v49, %v1168_v54 }
 0x3b8   :  { %673 = vrot.lane.b32.xlu1 %v1112_v1, %s1023_s30 }
 0x3c0   :  { %851 = vrot.lane.b32.xlu0 %v850_v46, %s1023_s30 }
 0x3c8   :  { %861 = vrot.lane.b32.xlu0 %v860_v25, %s1024_s4 }
 0x3cf   :  { %v465_v1 = vpop.xlane.xlu1 %464 }
 0x3d0   :  { %866 = vrot.lane.b32.xlu0 %v865_v26, %s1024_s4 }
 0x3e9   :  { %v459_v48 = vpop.xlane.xlu2 %458 }
 0x3ea   :  { %899 = vrcp.f32 %v459_v48 }
 0x3f0   :  { %v900_v50 = vpop.eup %899 }
 0x3f1   :  { %v485_v51 = vmul.f32 %v900_v50, %v886_v16  ;;  %v857_v52 = vpop.permute.xlu2 %856 }
 0x3f2   :  { %v859_v53 = vunpack.i.h.bf16 %v857_v52  ;;  %v858_v56 = vunpack.i.l.bf16 %v857_v52 }
 0x3f3   :  { %822 = vmatmul.msk.f32.vlgmr.msrb.gmra.mxu1 %vm173_vm8, %v485_v51 }
 0x3f4   :  { %538 = vmatpush.msra.mxu0 %v858_v56  ;;  %668 = vmatpush.msra.mxu1 %v859_v53 }
 0x3f5   :  { %821 = vmatmul.msk.f32.vlgmr.msra.gmra.mxu0 %vm173_vm8, %v484_v58 }
 0x3f9   :  { %v622_v60 = vpop.permute.xlu2 %621 }
 0x3fa   :  { %642 = vmatpush.msrb.mxu0 %v622_v60 }
 0x402   :  { %v462_v0 = vpop.xlane.xlu0 %461 }
 0x40a   :  { %v474_v2 = vpop.xlane.xlu1 %473 }
 0x412   :  { %v468_v54 = vpop.xlane.xlu1 %467 }
 0x413   :  { %901 = vrcp.f32 %v468_v54 }
 0x419   :  { %v902_v3 = vpop.eup %901 }
 0x41a   :  { %v488_v4 = vmul.f32 %v902_v3, %v892_v38 }
 0x41c   :  { %825 = vmatmul.msk.f32.vlgmr.msrb.gmra.mxu0 %vm173_vm8, %v488_v4 }
 0x41f   :  { %v471_v21 = vpop.xlane.xlu0 %470 }
 0x420   :  { %903 = vrcp.f32 %v471_v21 }
 0x421   :  { %905 = vrcp.f32 %v465_v1 }
 0x422   :  { %907 = vrcp.f32 %v462_v0 }
 0x423   :  { %909 = vrcp.f32 %v474_v2 }
 0x424   :  { %v514_v57 = vpop.f32.mrf.mxu3 }
 0x426   :  { %v904_v22 = vpop.eup %903 }
 0x427   :  { %v489_v25 = vmul.f32 %v904_v22, %v896_v45  ;;  %v906_v5 = vpop.eup %905 }
 0x428   :  { %v908_v23 = vpop.eup %907  ;;  %v487_v7 = vmul.f32 %v906_v5, %v1179_v11 }
 0x429   :  { %826 = vmatmul.msk.f32.vlgmr.msra.gmra.mxu1 %vm173_vm8, %v489_v25  ;;  %v486_v8 = vmul.f32 %v908_v23, %v1186_v28  ;;  %v910_v10 = vpop.eup %909 }
 0x42a   :  { %v674_v9 = vpop.permute.xlu1 %673  ;;  %v490_v12 = vmul.f32 %v910_v10, %v1191_v37 }
 0x432   :  { %v852_v24 = vpop.permute.xlu0 %851 }
 0x433   :  { %v854_v26 = vunpack.i.h.bf16 %v852_v24  ;;  %v853_v6 = vunpack.i.l.bf16 %v852_v24 }
 0x435   :  { %590 = vmatpush.msrb.mxu2 %v854_v26  ;;  %616 = vmatpush.msra.mxu3 %v853_v6 }
 0x436   :  { %823 = vmatmul.msk.f32.vlgmr.msrb.gmra.mxu2 %vm173_vm8, %v486_v8  ;;  %824 = vmatmul.msk.f32.vlgmr.msra.gmra.mxu3 %vm173_vm8, %v487_v7 }
 0x437   :  { %694 = vmatpush.msra.mxu2 %v674_v9 }
 0x43a   :  { %v862_v11 = vpop.permute.xlu0 %861 }
 0x43b   :  { %v864_v15 = vunpack.i.h.bf16 %v862_v11  ;;  %v863_v16 = vunpack.i.l.bf16 %v862_v11 }
 0x43d   :  { %769 = vmatpush.msrb.mxu3 %v863_v16 }
 0x43e   :  { %827 = vmatmul.msk.f32.vlgmr.msra.gmra.mxu2 %vm173_vm8, %v490_v12 }
 0x43f   :  { %770 = vmatpush.msrb.mxu3 %v864_v15 }
 0x442   :  { %v867_v61 = vpop.permute.xlu0 %866 }
 0x443   :  { %v869_v17 = vunpack.i.h.bf16 %v867_v61  ;;  %v868_v18 = vunpack.i.l.bf16 %v867_v61 }
 0x445   :  { %771 = vmatpush.msrb.mxu3 %v868_v18 }
 0x447   :  { %772 = vmatpush.msrb.mxu3 %v869_v17 }
 0x470   :  { %v566_v13 = vpop.f32.mrf.mxu1 }
 0x471   :  { %701 = vrot.lane.b32.xlu2 %v566_v13, %s1015_s21 }
 0x472   :  { %v540_v19 = vpop.f32.mrf.mxu0 }
 0x499   :  { %v644_v28 = vpop.f32.mrf.mxu0 }
 0x4a6   :  { %v670_v14 = vpop.f32.mrf.mxu1 }
 0x4a7   :  { %717 = vrot.lane.b32.xlu0 %v670_v14, %s1025_s5 }
 0x4b9   :  { %v592_v20 = vpop.f32.mrf.mxu2  ;;  %v618_v27 = vpop.f32.mrf.mxu3 }
 0x4ba   :  { %703 = vrot.lane.b32.xlu1 %v592_v20, %s1015_s21  ;;  %709 = vrot.lane.b32.xlu2 %v618_v27, %s1026_s6 }
 0x4c1   :  { %v696_v29 = vpop.f32.mrf.mxu2 }
 0x4c2   :  { %719 = vrot.lane.b32.xlu0 %v696_v29, %s1025_s5  ;;  %711 = vrot.lane.b32.xlu2 %v644_v28, %s1026_s6 }
 0x4c3   :  { %748 = vrot.lane.b32.xlu1 %v1085_v55, %s1024_s4 }
 0x4cb   :  { %v702_v30 = vpop.permute.xlu2 %701 }
 0x4cc   :  { %v723_v32 = vsel %vm173_vm8, %v514_v57, %v702_v30 }
 0x514   :  { %v710_v31 = vpop.permute.xlu2 %709 }
 0x515   :  { %v726_v33 = vsel %vm725_vm10, %v723_v32, %v710_v31 }
 0x519   :  { %v718_v34 = vpop.permute.xlu0 %717 }
 0x51a   :  { %v729_v35 = vsel %vm728_vm11, %v726_v33, %v718_v34 }
 0x51b   :  { %828 = vmatmul.msk.f32.vlgmr.msrb.gmra.mxu3 %vm62_vm0, %v729_v35 }
 0x51c   :  { %v712_v59 = vpop.permute.xlu2 %711 }
 0x52c   :  { %v704_v36 = vpop.permute.xlu1 %703 }
 0x52d   :  { %v724_v37 = vsel %vm173_vm8, %v540_v19, %v704_v36 }
 0x52e   :  { %v727_v38 = vsel %vm725_vm10, %v724_v37, %v712_v59 }
 0x534   :  { %v720_v62 = vpop.permute.xlu0 %719 }
 0x535   :  { %v730_v39 = vsel %vm728_vm11, %v727_v38, %v720_v62  ;;  %v749_v55 = vpop.permute.xlu1 %748 }
 0x536   :  { %829 = vmatmul.msk.f32.gmra.mxu3 %vm62_vm0, %v730_v39 }
 0x59e   :  { %v774_v40 = vpop.f32.mrf.mxu3 }
 0x59f   :  { %v775_v41 = vadd.f32 %v774_v40, %v749_v55 }
 0x5a1   :  { %780 = vst.msk [vmem:[#allocation8] sm:$0xff] %vm62_vm0, %v775_v41 }
 0x5b9   :  { %v777_v42 = vpop.f32.mrf.mxu3 }
 0x5ba   :  { %v778_v43 = vadd.f32 %v777_v42, %v749_v55 }
 0x5bc   :  { %781 = vst.msk [vmem:[#allocation8 + $0x8] sm:$0xff] %vm62_vm0, %v778_v43 }
 0x5bd   :  { %794 = dma.vmem_to_hbm [thread:$0]  %s787_s8, 256, %s789_s11, [#allocation4], %s1014_s20, %s1014_s20, %s1015_s21  }
 0x5be   :  { %1011 = dma.done.wait [#allocation4], 256  }
 0x5bf   :  { %1012 = vsyncadd [#allocation4], 4294967040 }
 0x5c0   :  { %799 = vsyncpa [#allocation3], 1 }
 0x5c1   :  { %800 = vsyncpa [#allocation6], 1 }
 0x5c2   :  { %801 = vsyncpa [#allocation4], 1 }

</bundles_post_ra>
